<compile_context>
chip_gen: v6e
topology: v6e:2x2x1
jax: 0.10.0
libtpu: 0.0.40
codegen_flags: <defaults>
</compile_context>

<pallas_src>
import jax
import jax.numpy as jnp
from jax.experimental import pallas as pl
from jax.experimental.pallas import tpu as pltpu

STATE_DIM = 3
ACTION_DIM = 1
HIDDEN = 128
IN_EXT = STATE_DIM + ACTION_DIM + 1   # +1 = ones row carrying the layer-1 bias
LANE = 128


def _cdiv(a, b):
    return (a + b - 1) // b


def _round_up(n, m):
    return _cdiv(n, m) * m


def _choose_tiling(B, tile_b, split_threshold=256):
    """Pick (num_tiles, TB, B_pad) for the batch (lane) axis."""
    nt = _cdiv(B, tile_b)
    if nt < 2 and B >= split_threshold:
        nt = 2                     # let both v7x TensorCores get a tile
    if nt > 1 and nt % 2 == 1:
        nt += 1                    # even tile count -> balanced megacore split
    TB = _round_up(_cdiv(B, nt), LANE)   # batch on the lane axis -> 128 multiple
    return nt, TB, nt * TB


def critic_kernel(xa_ref, w1e_ref, w2t_ref, b2_ref, o_ref):
    # xa_ref : [5, TB]    streamed  (rows: x0, x1, x2, a, 1)
    # w1e_ref: [128, 5]   resident  (w1^T with b1 appended as the last column)
    # w2t_ref: [1, 128]   resident
    # b2_ref : [1, 1]     SMEM scalar
    # o_ref  : [1, TB]    lane-dense output tile
    h = jnp.dot(w1e_ref[...], xa_ref[...],
                preferred_element_type=jnp.float32)          # MXU, K=5 -> [128, TB]
    h = jnp.maximum(h, 0.0)                                  # ReLU (VPU)
    q = jnp.dot(w2t_ref[...], h,
                preferred_element_type=jnp.float32)          # MXU, K=128 -> [1, TB]
    o_ref[...] = (q + b2_ref[0, 0]).astype(o_ref.dtype)


def critic_forward(x, a, params, tile_b=4096):
    """x: [B, 3], a: [B, 1] -> q: [B, 1]."""
    w1, b1, w2, b2 = params
    B = x.shape[0]

    num_tiles, TB, B_pad = _choose_tiling(B, tile_b)

    # Feature-major activation slab with the bias row folded in (one cheap
    # wrapper pass: ~20 B/row read + ~20 B/row write, far below roofline).
    ones = jnp.ones((B, 1), x.dtype)
    xa1 = jnp.concatenate([x, a, ones], axis=-1)             # [B, 5]
    if B_pad != B:
        xa1 = jnp.pad(xa1, ((0, B_pad - B), (0, 0)))
    xa1_t = xa1.T                                            # [5, B_pad]

    # Trace-time weight reshuffles (tiny, one-off, no per-batch HBM traffic).
    w1e = jnp.concatenate([w1, b1.reshape(1, HIDDEN)], axis=0).T   # [128, 5]
    w2t = w2.reshape(1, HIDDEN)                                    # [1, 128]
    b2s = b2.reshape(1, 1)                                         # SMEM scalar

    q_t = pl.pallas_call(
        critic_kernel,
        out_shape=jax.ShapeDtypeStruct((1, B_pad), jnp.float32),
        grid=(num_tiles,),
        in_specs=[
            pl.BlockSpec((IN_EXT, TB), lambda i: (0, i)),            # activations
            pl.BlockSpec((HIDDEN, IN_EXT), lambda i: (0, 0)),        # w1e resident
            pl.BlockSpec((1, HIDDEN), lambda i: (0, 0)),             # w2t resident
            pl.BlockSpec((1, 1), lambda i: (0, 0),
                         memory_space=pltpu.SMEM),                   # b2 scalar
        ],
        out_specs=pl.BlockSpec((1, TB), lambda i: (0, i)),           # lane-dense
        compiler_params=pltpu.CompilerParams(
            dimension_semantics=("parallel",)),
    )(xa1_t, w1e, w2t, b2s)

    # [1, B_pad] -> [B, 1]; row order is preserved (element j maps to batch j).
    return q_t.reshape(B_pad, 1)[:B]


def init_params(key):
    """PyTorch nn.Linear default init: U[-1/sqrt(fan_in), +1/sqrt(fan_in)]."""
    k1, k2, k3, k4 = jax.random.split(key, 4)
    fan1 = STATE_DIM + ACTION_DIM
    lim1 = 1.0 / jnp.sqrt(float(fan1))
    w1 = jax.random.uniform(k1, (fan1, HIDDEN), jnp.float32, -lim1, lim1)
    b1 = jax.random.uniform(k2, (1, HIDDEN), jnp.float32, -lim1, lim1)
    lim2 = 1.0 / jnp.sqrt(float(HIDDEN))
    w2 = jax.random.uniform(k3, (HIDDEN, 1), jnp.float32, -lim2, lim2)
    b2 = jax.random.uniform(k4, (1, 1), jnp.float32, -lim2, lim2)
    return (w1, b1, w2, b2)


def _reference(x, a, params):
    w1, b1, w2, b2 = params
    xa = jnp.concatenate([x, a], axis=-1)
    return jnp.maximum(xa @ w1 + b1, 0.0) @ w2 + b2


if __name__ == "__main__":
    key = jax.random.PRNGKey(0)
    kp, kx1, ka1, kx2, ka2 = jax.random.split(key, 5)
    params = init_params(kp)

    # Small batch (not a multiple of 8/128) -> single tile, padding path.
    B1 = 6
    x1 = jax.random.normal(kx1, (B1, STATE_DIM), jnp.float32)
    a1 = jax.random.normal(ka1, (B1, ACTION_DIM), jnp.float32)
    q1 = critic_forward(x1, a1, params)
    jax.block_until_ready(q1)
    assert q1.shape == (B1, 1)
    assert jnp.allclose(q1, _reference(x1, a1, params), atol=2e-4, rtol=1e-4)

    # Medium batch -> multi-tile grid (exercises the parallel batch axis).
    B2 = 300
    x2 = jax.random.normal(kx2, (B2, STATE_DIM), jnp.float32)
    a2 = jax.random.normal(ka2, (B2, ACTION_DIM), jnp.float32)
    q2 = critic_forward(x2, a2, params)
    jax.block_until_ready(q2)
    assert q2.shape == (B2, 1)
    assert jnp.allclose(q2, _reference(x2, a2, params), atol=2e-4, rtol=1e-4)

    print("KERNEL_OK")
</pallas_src>

<mosaic_0001>
module attributes {stable_mosaic.version = 11 : i64} {
  func.func @critic_kernel(%arg0: i32, %arg1: memref<5x128xf32, #tpu.memory_space<vmem>>, %arg2: memref<128x5xf32, #tpu.memory_space<vmem>>, %arg3: memref<1x128xf32, #tpu.memory_space<vmem>>, %arg4: memref<1x1xf32, #tpu.memory_space<smem>>, %arg5: memref<1x128xf32, #tpu.memory_space<vmem>>) attributes {dimension_semantics = [#tpu.dimension_semantics<parallel>], iteration_bounds = array<i64: 1>, scalar_prefetch = 0 : i64, scratch_operands = 0 : i64, tpu.core_type = #tpu.core_type<tc>, window_params = [{transform_indices = @transform_0, window_bounds = array<i64: 5, 128>}, {pipeline_mode = #tpu.pipeline_mode<synchronous>, transform_indices = @transform_1, window_bounds = array<i64: 128, 5>}, {pipeline_mode = #tpu.pipeline_mode<synchronous>, transform_indices = @transform_2, window_bounds = array<i64: 1, 128>}, {transform_indices = @transform_3, window_bounds = array<i64: 1, 1>}, {transform_indices = @transform_4, window_bounds = array<i64: 1, 128>}]} {
    %c0 = arith.constant 0 : index
    %c0_0 = arith.constant 0 : index
    %0 = vector.load %arg2[%c0, %c0_0] : memref<128x5xf32, #tpu.memory_space<vmem>>, vector<128x5xf32>
    %c0_1 = arith.constant 0 : index
    %c0_2 = arith.constant 0 : index
    %1 = vector.load %arg1[%c0_1, %c0_2] : memref<5x128xf32, #tpu.memory_space<vmem>>, vector<5x128xf32>
    %cst = arith.constant dense<0.000000e+00> : vector<128x128xf32>
    %2 = tpu.matmul %0, %1, %cst {dimension_numbers = #tpu.dot_dimension_numbers<[1], [0], [0], [1], [0, 0, 1, 1], [], []>} : vector<128x5xf32>, vector<5x128xf32>, vector<128x128xf32> -> vector<128x128xf32>
    %cst_3 = arith.constant 0.000000e+00 : f32
    %3 = vector.broadcast %cst_3 : f32 to vector<128x128xf32>
    %4 = arith.maximumf %2, %3 : vector<128x128xf32>
    %c0_4 = arith.constant 0 : index
    %c0_5 = arith.constant 0 : index
    %5 = vector.load %arg3[%c0_4, %c0_5] : memref<1x128xf32, #tpu.memory_space<vmem>>, vector<1x128xf32>
    %cst_6 = arith.constant dense<0.000000e+00> : vector<1x128xf32>
    %6 = tpu.matmul %5, %4, %cst_6 {dimension_numbers = #tpu.dot_dimension_numbers<[1], [0], [0], [1], [0, 0, 1, 1], [], []>} : vector<1x128xf32>, vector<128x128xf32>, vector<1x128xf32> -> vector<1x128xf32>
    %c0_7 = arith.constant 0 : index
    %c0_8 = arith.constant 0 : index
    %7 = memref.load %arg4[%c0_7, %c0_8] : memref<1x1xf32, #tpu.memory_space<smem>>
    %8 = vector.broadcast %7 : f32 to vector<1x128xf32>
    %9 = arith.addf %6, %8 : vector<1x128xf32>
    %c0_9 = arith.constant 0 : index
    %c0_10 = arith.constant 0 : index
    %10 = vector.load %arg5[%c0_9, %c0_10] : memref<1x128xf32, #tpu.memory_space<vmem>>, vector<1x128xf32>
    tpu.vector_store %arg5[%c0_9, %c0_10], %9 {strides = array<i32>} : memref<1x128xf32, #tpu.memory_space<vmem>>, vector<1x128xf32>,
    return
  }
  func.func @transform_0(%arg0: i32) -> (i32, i32) {
    %c0_i32 = arith.constant 0 : i32
    %c0_i32_0 = arith.constant 0 : i32
    return %c0_i32, %arg0 : i32, i32
  }
  func.func @transform_1(%arg0: i32) -> (i32, i32) {
    %c0_i32 = arith.constant 0 : i32
    %c0_i32_0 = arith.constant 0 : i32
    %c0_i32_1 = arith.constant 0 : i32
    return %c0_i32, %c0_i32_0 : i32, i32
  }
  func.func @transform_2(%arg0: i32) -> (i32, i32) {
    %c0_i32 = arith.constant 0 : i32
    %c0_i32_0 = arith.constant 0 : i32
    %c0_i32_1 = arith.constant 0 : i32
    return %c0_i32, %c0_i32_0 : i32, i32
  }
  func.func @transform_3(%arg0: i32) -> (i32, i32) {
    %c0_i32 = arith.constant 0 : i32
    %c0_i32_0 = arith.constant 0 : i32
    %c0_i32_1 = arith.constant 0 : i32
    return %c0_i32, %c0_i32_0 : i32, i32
  }
  func.func @transform_4(%arg0: i32) -> (i32, i32) {
    %c0_i32 = arith.constant 0 : i32
    %c0_i32_0 = arith.constant 0 : i32
    return %c0_i32, %arg0 : i32, i32
  }
}

</mosaic_0001>

<bundles_post_ra>
// kernel: tpu_custom_call.1
= control target key start
LH: loop header
LB: loop body
LE: loop exit
PB: predicated region body
PF: predicated region fallthrough
CT: control target
= control target key end

     0   :  { %vm85_vm0 = vcmask 1044480   ;;  %vm36_vm1 = vcmask 39936   ;;  %s596_s0 = inlined_call_operand.vmem [shape: f32[5,128], index: 0, kind: input, shape index: {}]   ;;  %s597_s1 = inlined_call_operand.vmem [shape: f32[128,5], index: 1, kind: input, shape index: {}]   ;;  %s598_s2 = inlined_call_operand.vmem [shape: f32[1,128], index: 2, kind: input, shape index: {}]   ;;  %s599_s3 = inlined_call_operand.<no memory space> [shape: f32[1,1], index: 3, kind: input, shape index: {}]   ;;  %s600_s4 = inlined_call_operand.hbm [shape: f32[1,128], index: 4, kind: output, shape index: {}]  }
   0x1   :  { %v35_v0 = vld [vmem:[%s596_s0] sm:$0x1f]  ;;  %v20_v2 = vld [vmem:[%s597_s1 + $0x8] sm:$0xff]  ;;  %v21_v3 = vld [vmem:[%s597_s1 + $0x10] sm:$0xff] }
   0x2   :  { %v19_v1 = vld [vmem:[%s597_s1] sm:$0xff]  ;;  %389 = vmatprep.subr.msk.mxu0 %vm85_vm0, %v35_v0  ;;  %v22_v4 = vld [vmem:[%s597_s1 + $0x18] sm:$0xff] }
   0x3   :  { %391 = vmatprep.mubr.msk.f32.mxu0 %vm36_vm1, %v19_v1  ;;  %390 = vmatpush3.msk.msra.mxu0 %vm85_vm0, %v35_v0  ;;  %v23_v5 = vld [vmem:[%s597_s1 + $0x20] sm:$0xff] }
   0x4   :  { %392 = vmatmul.mubr.msk.f32.vlgmr.msra.gmra.mxu0 %vm36_vm1, %v20_v2 }
   0x5   :  { %394 = vmatprep.mubr.msk.f32.mxu0 %vm36_vm1, %v21_v3 }
   0x6   :  { %10 = vsyncpa [#allocation4], 0  ;;  %v24_v6 = vld [vmem:[%s597_s1 + $0x28] sm:$0xff]  ;;  %v25_v7 = vld [vmem:[%s597_s1 + $0x30] sm:$0xff]  ;;  %v475_v17 = vmov 0.0   ;;  %vm476_vm2 = vmmov 0   ;;  %v252_v51 = vstv %s599_s3 }
   0x7   :  { %v26_v8 = vld [vmem:[%s597_s1 + $0x38] sm:$0xff]  ;;  %v27_v9 = vld [vmem:[%s597_s1 + $0x40] sm:$0xff]  ;;  %v28_v10 = vld [vmem:[%s597_s1 + $0x48] sm:$0xff]  ;;  %415 = vmatprep.subr.mxu1 %v475_v17  ;;  %447 = vmatprep.mubr.msk.f32.mxu1 %vm476_vm2, %v475_v17  ;;  %s477_s24 = smov [#allocation3]  }
   0x8   :  { %395 = vmatmul.mubr.msk.f32.gmra.mxu0 %vm36_vm1, %v22_v4  ;;  %v29_v11 = vld [vmem:[%s597_s1 + $0x50] sm:$0xff]  ;;  %v30_v12 = vld [vmem:[%s597_s1 + $0x58] sm:$0xff]  ;;  %v31_v13 = vld [vmem:[%s597_s1 + $0x60] sm:$0xff]  ;;  %s330_s25 = sshll.u32 %s477_s24, 4  ;;  %s331_s25 = int_to_ptr.vmem [resolvable:$true] %s330_s25 }
   0x9   :  { %397 = vmatprep.mubr.msk.f32.mxu0 %vm36_vm1, %v23_v5  ;;  %v32_v14 = vld [vmem:[%s597_s1 + $0x68] sm:$0xff]  ;;  %v33_v15 = vld [vmem:[%s597_s1 + $0x70] sm:$0xff]  ;;  %v34_v16 = vld [vmem:[%s597_s1 + $0x78] sm:$0xff]  ;;  %s453_s26 = scalar_lea.vmem %s331_s25, 16  ;;  %s457_s27 = scalar_lea.vmem %s331_s25, 32 }
   0xa   :  { %v250_v50 = vld [vmem:[%s598_s2] sm:$0x1]  ;;  %p454_p0 = scmp.ne.s32.totalorder %s331_s25, %s453_s26  ;;  %p458_p1 = scmp.lt.s32.totalorder %s331_s25, %s331_s25 }
   0xb   :  { %p459_p2 = scmp.lt.s32.totalorder %s457_s27, %s453_s26 }
   0xc   :  { %398 = vmatmul.mubr.msk.f32.gmra.mxu0 %vm36_vm1, %v24_v6 }
   0xd   :  { %400 = vmatprep.mubr.msk.f32.mxu0 %vm36_vm1, %v25_v7  ;;  %p460_p3 = por %p459_p2, %p458_p1 }
   0xf   :  { %p461_p4 = pnand %p460_p3, %p454_p0 }
  0x10   :  { %401 = vmatmul.mubr.msk.f32.gmra.mxu0 %vm36_vm1, %v26_v8 }
  0x11   :  { %403 = vmatprep.mubr.msk.f32.mxu0 %vm36_vm1, %v27_v9 }
  0x14   :  { %404 = vmatmul.mubr.msk.f32.gmra.mxu0 %vm36_vm1, %v28_v10 }
  0x15   :  { %406 = vmatprep.mubr.msk.f32.mxu0 %vm36_vm1, %v29_v11 }
  0x18   :  { %407 = vmatmul.mubr.msk.f32.gmra.mxu0 %vm36_vm1, %v30_v12 }
  0x19   :  { %409 = vmatprep.mubr.msk.f32.mxu0 %vm36_vm1, %v31_v13 }
  0x1c   :  { %410 = vmatmul.mubr.msk.f32.gmra.mxu0 %vm36_vm1, %v32_v14 }
  0x1d   :  { %412 = vmatprep.mubr.msk.f32.mxu0 %vm36_vm1, %v33_v15 }
  0x20   :  { %413 = vmatmul.mubr.msk.f32.gmra.mxu0 %vm36_vm1, %v34_v16 }
  0xc4   :  { %v393_v18 = vpop.f32.mrf.mxu0 }
  0xc5   :  { %v235_v48 = vmax.f32 %v393_v18, 0.0 }
  0xc6   :  { %v155_v19 = vpop.f32.mrf.mxu0 }
  0xc7   :  { %v234_v49 = vmax.f32 %v155_v19, 0.0 }
  0xc8   :  { %v396_v20 = vpop.f32.mrf.mxu0 }
  0xc9   :  { %v237_v46 = vmax.f32 %v396_v20, 0.0 }
  0xca   :  { %v165_v21 = vpop.f32.mrf.mxu0 }
  0xcb   :  { %v236_v47 = vmax.f32 %v165_v21, 0.0 }
  0xcc   :  { %v399_v22 = vpop.f32.mrf.mxu0 }
  0xcd   :  { %v239_v44 = vmax.f32 %v399_v22, 0.0 }
  0xce   :  { %v175_v23 = vpop.f32.mrf.mxu0 }
  0xcf   :  { %v238_v45 = vmax.f32 %v175_v23, 0.0 }
  0xd0   :  { %v402_v24 = vpop.f32.mrf.mxu0 }
  0xd1   :  { %v241_v42 = vmax.f32 %v402_v24, 0.0 }
  0xd2   :  { %v185_v25 = vpop.f32.mrf.mxu0 }
  0xd3   :  { %v240_v43 = vmax.f32 %v185_v25, 0.0 }
  0xd4   :  { %v405_v26 = vpop.f32.mrf.mxu0 }
  0xd5   :  { %v243_v40 = vmax.f32 %v405_v26, 0.0 }
  0xd6   :  { %v195_v27 = vpop.f32.mrf.mxu0 }
  0xd7   :  { %v242_v41 = vmax.f32 %v195_v27, 0.0 }
  0xd8   :  { %v408_v28 = vpop.f32.mrf.mxu0 }
  0xd9   :  { %v245_v38 = vmax.f32 %v408_v28, 0.0 }
  0xda   :  { %v205_v29 = vpop.f32.mrf.mxu0 }
  0xdb   :  { %v244_v39 = vmax.f32 %v205_v29, 0.0 }
  0xdc   :  { %v411_v30 = vpop.f32.mrf.mxu0 }
  0xdd   :  { %v247_v36 = vmax.f32 %v411_v30, 0.0 }
  0xde   :  { %v215_v31 = vpop.f32.mrf.mxu0 }
  0xdf   :  { %v246_v37 = vmax.f32 %v215_v31, 0.0 }
  0xe0   :  { %v414_v32 = vpop.f32.mrf.mxu0 }
  0xe1   :  { %v249_v33 = vmax.f32 %v414_v32, 0.0 }
  0xe2   :  { %v225_v34 = vpop.f32.mrf.mxu0 }
  0xe3   :  { %v248_v35 = vmax.f32 %v225_v34, 0.0  ;;  %416 = vmatpush3.msra.mxu1 %v249_v33 }
  0xe4   :  { %417 = vmatprep.subr.mxu1 %v475_v17 }
  0xe5   :  { %418 = vmatpush3.msra.mxu1 %v248_v35 }
  0xe6   :  { %419 = vmatprep.subr.mxu1 %v475_v17 }
  0xe7   :  { %420 = vmatpush3.msra.mxu1 %v247_v36 }
  0xe8   :  { %421 = vmatprep.subr.mxu1 %v475_v17 }
  0xe9   :  { %422 = vmatpush3.msra.mxu1 %v246_v37 }
  0xea   :  { %423 = vmatprep.subr.mxu1 %v475_v17 }
  0xeb   :  { %424 = vmatpush3.msra.mxu1 %v245_v38 }
  0xec   :  { %425 = vmatprep.subr.mxu1 %v475_v17 }
  0xed   :  { %426 = vmatpush3.msra.mxu1 %v244_v39 }
  0xee   :  { %427 = vmatprep.subr.mxu1 %v475_v17 }
  0xef   :  { %428 = vmatpush3.msra.mxu1 %v243_v40 }
  0xf0   :  { %429 = vmatprep.subr.mxu1 %v475_v17 }
  0xf1   :  { %430 = vmatpush3.msra.mxu1 %v242_v41 }
  0xf2   :  { %431 = vmatprep.subr.mxu1 %v475_v17 }
  0xf3   :  { %432 = vmatpush3.msra.mxu1 %v241_v42 }
  0xf4   :  { %433 = vmatprep.subr.mxu1 %v475_v17 }
  0xf5   :  { %434 = vmatpush3.msra.mxu1 %v240_v43 }
  0xf6   :  { %435 = vmatprep.subr.mxu1 %v475_v17 }
  0xf7   :  { %436 = vmatpush3.msra.mxu1 %v239_v44 }
  0xf8   :  { %437 = vmatprep.subr.mxu1 %v475_v17 }
  0xf9   :  { %438 = vmatpush3.msra.mxu1 %v238_v45 }
  0xfa   :  { %439 = vmatprep.subr.mxu1 %v475_v17 }
  0xfb   :  { %440 = vmatpush3.msra.mxu1 %v237_v46 }
  0xfc   :  { %441 = vmatprep.subr.mxu1 %v475_v17 }
  0xfd   :  { %442 = vmatpush3.msra.mxu1 %v236_v47 }
  0xfe   :  { %443 = vmatprep.subr.mxu1 %v475_v17 }
  0xff   :  { %444 = vmatpush3.msra.mxu1 %v235_v48 }
 0x100   :  { %445 = vmatprep.subr.mxu1 %v475_v17 }
 0x101   :  { %446 = vmatpush3.msra.mxu1 %v234_v49 }
 0x102   :  { %448 = vmatmul.mubr.f32.vlgmr.msra.gmra.mxu1 %v250_v50 }
 0x1c2   :  { %v319_v52 = vpop.f32.mrf.mxu1 }
 0x1c3   :  { %v320_v53 = vadd.f32 %v319_v52, %v252_v51 }
 0x1c4   :  { %v449_v54 = vpop.f32.mrf.mxu1 }
 0x1c5   :  { %323 = vst [vmem:[#allocation3] sm:$0x1] %v320_v53 }
 0x1c6   :  { %464 = shalt.err (!%p461_p4)
}
 0x1c7   :  { %333 = dma.vmem_to_hbm [thread:$0]  %s331_s25, 16, %s600_s4, [#allocation4]  }
 0x1c8   :  { %473 = dma.done.wait [#allocation4], 16  }
 0x1c9   :  { %474 = vsyncadd [#allocation4], 4294967280 }
 0x1ca   :  { %337 = vsyncpa [#allocation4], 1 }

</bundles_post_ra>
